<compile_context>
chip_gen: v5e
topology: v5e:2x2
jax: 0.10.0
libtpu: 0.0.40
codegen_flags: <defaults>
</compile_context>

<pallas_src>
import jax
import jax.numpy as jnp
from jax.experimental import pallas as pl
from jax.experimental.pallas import tpu as pltpu


def _round_up(x, m):
    return ((x + m - 1) // m) * m


def _layer1_kernel(a_ref, x_ref, w1_ref, b1_ref, w2_ref, g_ref, acc_ref):
    """G = relu((A_hat @ X) @ W1 + b1) @ W2   (row tile i, K-reduction k)."""
    k = pl.program_id(1)

    @pl.when(k == 0)
    def _():
        acc_ref[...] = jnp.zeros_like(acc_ref)

    # Re-associated layer 1: accumulate (A_hat @ X) first (F < H).
    acc_ref[...] += jnp.dot(
        a_ref[...], x_ref[...], preferred_element_type=jnp.float32
    )

    @pl.when(k == pl.num_programs(1) - 1)
    def _():
        ax = acc_ref[...].astype(jnp.bfloat16)
        h1 = jnp.dot(ax, w1_ref[...], preferred_element_type=jnp.float32)
        h1 = jnp.maximum(h1 + b1_ref[...], 0.0)  # bias + ReLU once, at finalize
        g = jnp.dot(
            h1.astype(jnp.bfloat16), w2_ref[...],
            preferred_element_type=jnp.float32,
        )
        g_ref[...] = g.astype(g_ref.dtype)


def _layer2_kernel(a_ref, g_ref, b2_ref, out_ref, acc_ref):
    """out = A_hat @ G + b2   (row tile i, K-reduction k)."""
    k = pl.program_id(1)

    @pl.when(k == 0)
    def _():
        acc_ref[...] = jnp.zeros_like(acc_ref)

    acc_ref[...] += jnp.dot(
        a_ref[...], g_ref[...], preferred_element_type=jnp.float32
    )

    @pl.when(k == pl.num_programs(1) - 1)
    def _():
        out_ref[...] = acc_ref[...] + b2_ref[...]  # bias only at finalize


def gcn_drop_forward(a_hat, x, w1, b1, w2, b2, *, tile=256):
    n, f = x.shape
    h = w1.shape[1]
    c = w2.shape[1]

    n_p = _round_up(n, tile)
    f_p = _round_up(f, 128)
    h_p = _round_up(h, 128)
    c_p = _round_up(c, 128)

    def pad2(m, rows, cols):
        return jnp.pad(m, ((0, rows - m.shape[0]), (0, cols - m.shape[1])))

    # bf16 MXU operands (f32 accumulation happens inside the kernels).
    a_p = pad2(a_hat, n_p, n_p).astype(jnp.bfloat16)
    x_p = pad2(x, n_p, f_p).astype(jnp.bfloat16)
    w1_p = pad2(w1, f_p, h_p).astype(jnp.bfloat16)
    b1_p = pad2(b1, 1, h_p).astype(jnp.float32)
    w2_p = pad2(w2, h_p, c_p).astype(jnp.bfloat16)
    b2_p = pad2(b2, 1, c_p).astype(jnp.float32)

    nm = n_p // tile
    nk = n_p // tile

    # --- layer 1 (with H1 @ W2 fused into its finalize) -------------------
    g = pl.pallas_call(
        _layer1_kernel,
        out_shape=jax.ShapeDtypeStruct((n_p, c_p), jnp.bfloat16),
        grid=(nm, nk),
        in_specs=[
            pl.BlockSpec((tile, tile), lambda i, k: (i, k)),  # A_hat
            pl.BlockSpec((tile, f_p), lambda i, k: (k, 0)),   # X
            pl.BlockSpec((f_p, h_p), lambda i, k: (0, 0)),    # W1
            pl.BlockSpec((1, h_p), lambda i, k: (0, 0)),      # b1
            pl.BlockSpec((h_p, c_p), lambda i, k: (0, 0)),    # W2
        ],
        out_specs=pl.BlockSpec((tile, c_p), lambda i, k: (i, 0)),
        scratch_shapes=[pltpu.VMEM((tile, f_p), jnp.float32)],
        compiler_params=pltpu.CompilerParams(
            dimension_semantics=("parallel", "arbitrary")
        ),
    )(a_p, x_p, w1_p, b1_p, w2_p)

    # --- layer 2: out = A_hat @ G + b2 -------------------------------------
    out_p = pl.pallas_call(
        _layer2_kernel,
        out_shape=jax.ShapeDtypeStruct((n_p, c_p), jnp.float32),
        grid=(nm, nk),
        in_specs=[
            pl.BlockSpec((tile, tile), lambda i, k: (i, k)),  # A_hat
            pl.BlockSpec((tile, c_p), lambda i, k: (k, 0)),   # G
            pl.BlockSpec((1, c_p), lambda i, k: (0, 0)),      # b2
        ],
        out_specs=pl.BlockSpec((tile, c_p), lambda i, k: (i, 0)),
        scratch_shapes=[pltpu.VMEM((tile, c_p), jnp.float32)],
        compiler_params=pltpu.CompilerParams(
            dimension_semantics=("parallel", "arbitrary")
        ),
    )(a_p, g, b2_p)

    return out_p[:n, :c]


def build_normalized_adjacency(key, n):
    """Random symmetric graph with self loops, DGL 'both' normalization."""
    raw = jax.random.uniform(key, (n, n))
    adj = (raw + raw.T > 1.0).astype(jnp.float32)
    adj = adj + jnp.eye(n, dtype=jnp.float32)  # self loops
    adj = jnp.clip(adj, 0.0, 1.0)
    deg = jnp.sum(adj, axis=1)
    d_inv_sqrt = 1.0 / jnp.sqrt(deg)
    return adj * d_inv_sqrt[:, None] * d_inv_sqrt[None, :]


if __name__ == "__main__":
    # Small shapes consistent with the module:
    #   N nodes = 16, feature_number = 32, nhid = 128, label_number = 8
    N, FEAT, NHID, NLABEL = 16, 32, 128, 8

    key = jax.random.PRNGKey(0)
    k_adj, k_x, k_w1, k_w2 = jax.random.split(key, 4)

    a_hat = build_normalized_adjacency(k_adj, N)
    x = jax.random.normal(k_x, (N, FEAT), dtype=jnp.float32)

    # Deterministic parameter init (GraphConv: xavier-style weight, zero bias)
    w1 = jax.random.normal(k_w1, (FEAT, NHID), dtype=jnp.float32) * (
        1.0 / jnp.sqrt(jnp.float32(FEAT))
    )
    b1 = jnp.zeros((1, NHID), dtype=jnp.float32)
    w2 = jax.random.normal(k_w2, (NHID, NLABEL), dtype=jnp.float32) * (
        1.0 / jnp.sqrt(jnp.float32(NHID))
    )
    b2 = jnp.zeros((1, NLABEL), dtype=jnp.float32)

    out = gcn_drop_forward(a_hat, x, w1, b1, w2, b2)
    out = jax.block_until_ready(out)

    # Pure-JAX f32 reference (eval-mode forward). Kernel uses bf16 MXU inputs,
    # so the comparison tolerance is loosened accordingly.
    ref = a_hat @ jnp.maximum(a_hat @ (x @ w1) + b1, 0.0) @ w2 + b2
    assert out.shape == (N, NLABEL)
    assert jnp.allclose(out, ref, atol=5e-2, rtol=5e-2)

    print("KERNEL_OK")
</pallas_src>

<mosaic_0001>
module attributes {stable_mosaic.version = 11 : i64} {
  func.func @_layer1_kernel(%arg0: i32, %arg1: i32, %arg2: memref<256x256xbf16, #tpu.memory_space<vmem>>, %arg3: memref<256x128xbf16, #tpu.memory_space<vmem>>, %arg4: memref<128x128xbf16, #tpu.memory_space<vmem>>, %arg5: memref<1x128xf32, #tpu.memory_space<vmem>>, %arg6: memref<128x128xbf16, #tpu.memory_space<vmem>>, %arg7: memref<256x128xbf16, #tpu.memory_space<vmem>>, %arg8: memref<256x128xf32, #tpu.memory_space<vmem>>) attributes {dimension_semantics = [#tpu.dimension_semantics<parallel>, #tpu.dimension_semantics<arbitrary>], iteration_bounds = array<i64: 1, 1>, scalar_prefetch = 0 : i64, scratch_operands = 1 : i64, tpu.core_type = #tpu.core_type<tc>, window_params = [{transform_indices = @transform_0, window_bounds = array<i64: 256, 256>}, {transform_indices = @transform_1, window_bounds = array<i64: 256, 128>}, {pipeline_mode = #tpu.pipeline_mode<synchronous>, transform_indices = @transform_2, window_bounds = array<i64: 128, 128>}, {pipeline_mode = #tpu.pipeline_mode<synchronous>, transform_indices = @transform_3, window_bounds = array<i64: 1, 128>}, {pipeline_mode = #tpu.pipeline_mode<synchronous>, transform_indices = @transform_4, window_bounds = array<i64: 128, 128>}, {transform_indices = @transform_5, window_bounds = array<i64: 256, 128>}]} {
    %c0_i32 = arith.constant 0 : i32
    %0 = arith.cmpi eq, %arg1, %c0_i32 : i32
    %1 = arith.extui %0 : i1 to i32
    %c0_i32_0 = arith.constant 0 : i32
    %2 = arith.cmpi ne, %1, %c0_i32_0 : i32
    scf.if %2 {
      %cst_10 = arith.constant 0.000000e+00 : f32
      %12 = vector.broadcast %cst_10 : f32 to vector<256x128xf32>
      %c0_11 = arith.constant 0 : index
      %c0_12 = arith.constant 0 : index
      %13 = vector.load %arg8[%c0_11, %c0_12] : memref<256x128xf32, #tpu.memory_space<vmem>>, vector<256x128xf32>
      tpu.vector_store %arg8[%c0_11, %c0_12], %12 {strides = array<i32>} : memref<256x128xf32, #tpu.memory_space<vmem>>, vector<256x128xf32>,
    } else {
    }
    %c0 = arith.constant 0 : index
    %c0_1 = arith.constant 0 : index
    %3 = vector.load %arg8[%c0, %c0_1] : memref<256x128xf32, #tpu.memory_space<vmem>>, vector<256x128xf32>
    %c0_2 = arith.constant 0 : index
    %c0_3 = arith.constant 0 : index
    %4 = vector.load %arg2[%c0_2, %c0_3] : memref<256x256xbf16, #tpu.memory_space<vmem>>, vector<256x256xbf16>
    %c0_4 = arith.constant 0 : index
    %c0_5 = arith.constant 0 : index
    %5 = vector.load %arg3[%c0_4, %c0_5] : memref<256x128xbf16, #tpu.memory_space<vmem>>, vector<256x128xbf16>
    %cst = arith.constant dense<0.000000e+00> : vector<256x128xf32>
    %6 = tpu.matmul %4, %5, %cst {dimension_numbers = #tpu.dot_dimension_numbers<[1], [0], [0], [1], [0, 0, 1, 1], [], []>} : vector<256x256xbf16>, vector<256x128xbf16>, vector<256x128xf32> -> vector<256x128xf32>
    %7 = arith.addf %3, %6 : vector<256x128xf32>
    %c0_6 = arith.constant 0 : index
    %c0_7 = arith.constant 0 : index
    %8 = vector.load %arg8[%c0_6, %c0_7] : memref<256x128xf32, #tpu.memory_space<vmem>>, vector<256x128xf32>
    tpu.vector_store %arg8[%c0_6, %c0_7], %7 {strides = array<i32>} : memref<256x128xf32, #tpu.memory_space<vmem>>, vector<256x128xf32>,
    %c0_i32_8 = arith.constant 0 : i32
    %9 = arith.cmpi eq, %arg1, %c0_i32_8 : i32
    %10 = arith.extui %9 : i1 to i32
    %c0_i32_9 = arith.constant 0 : i32
    %11 = arith.cmpi ne, %10, %c0_i32_9 : i32
    scf.if %11 {
      %c0_10 = arith.constant 0 : index
      %c0_11 = arith.constant 0 : index
      %12 = vector.load %arg8[%c0_10, %c0_11] : memref<256x128xf32, #tpu.memory_space<vmem>>, vector<256x128xf32>
      %13 = arith.truncf %12 : vector<256x128xf32> to vector<256x128xbf16>
      %c0_12 = arith.constant 0 : index
      %c0_13 = arith.constant 0 : index
      %14 = vector.load %arg4[%c0_12, %c0_13] : memref<128x128xbf16, #tpu.memory_space<vmem>>, vector<128x128xbf16>
      %cst_14 = arith.constant dense<0.000000e+00> : vector<256x128xf32>
      %15 = tpu.matmul %13, %14, %cst_14 {dimension_numbers = #tpu.dot_dimension_numbers<[1], [0], [0], [1], [0, 0, 1, 1], [], []>} : vector<256x128xbf16>, vector<128x128xbf16>, vector<256x128xf32> -> vector<256x128xf32>
      %c0_15 = arith.constant 0 : index
      %c0_16 = arith.constant 0 : index
      %16 = vector.load %arg5[%c0_15, %c0_16] : memref<1x128xf32, #tpu.memory_space<vmem>>, vector<1x128xf32>
      %17 = vector.broadcast %16 : vector<1x128xf32> to vector<256x128xf32>
      %18 = arith.addf %15, %17 : vector<256x128xf32>
      %cst_17 = arith.constant 0.000000e+00 : f32
      %19 = vector.broadcast %cst_17 : f32 to vector<256x128xf32>
      %20 = arith.maximumf %18, %19 : vector<256x128xf32>
      %21 = arith.truncf %20 : vector<256x128xf32> to vector<256x128xbf16>
      %c0_18 = arith.constant 0 : index
      %c0_19 = arith.constant 0 : index
      %22 = vector.load %arg6[%c0_18, %c0_19] : memref<128x128xbf16, #tpu.memory_space<vmem>>, vector<128x128xbf16>
      %cst_20 = arith.constant dense<0.000000e+00> : vector<256x128xf32>
      %23 = tpu.matmul %21, %22, %cst_20 {dimension_numbers = #tpu.dot_dimension_numbers<[1], [0], [0], [1], [0, 0, 1, 1], [], []>} : vector<256x128xbf16>, vector<128x128xbf16>, vector<256x128xf32> -> vector<256x128xf32>
      %24 = arith.truncf %23 : vector<256x128xf32> to vector<256x128xbf16>
      %c0_21 = arith.constant 0 : index
      %c0_22 = arith.constant 0 : index
      %25 = vector.load %arg7[%c0_21, %c0_22] : memref<256x128xbf16, #tpu.memory_space<vmem>>, vector<256x128xbf16>
      tpu.vector_store %arg7[%c0_21, %c0_22], %24 {strides = array<i32>} : memref<256x128xbf16, #tpu.memory_space<vmem>>, vector<256x128xbf16>,
    } else {
    }
    return
  }
  func.func @transform_0(%arg0: i32, %arg1: i32) -> (i32, i32) {
    %c0_i32 = arith.constant 0 : i32
    return %arg0, %arg1 : i32, i32
  }
  func.func @transform_1(%arg0: i32, %arg1: i32) -> (i32, i32) {
    %c0_i32 = arith.constant 0 : i32
    %c0_i32_0 = arith.constant 0 : i32
    return %arg1, %c0_i32 : i32, i32
  }
  func.func @transform_2(%arg0: i32, %arg1: i32) -> (i32, i32) {
    %c0_i32 = arith.constant 0 : i32
    %c0_i32_0 = arith.constant 0 : i32
    %c0_i32_1 = arith.constant 0 : i32
    return %c0_i32, %c0_i32_0 : i32, i32
  }
  func.func @transform_3(%arg0: i32, %arg1: i32) -> (i32, i32) {
    %c0_i32 = arith.constant 0 : i32
    %c0_i32_0 = arith.constant 0 : i32
    %c0_i32_1 = arith.constant 0 : i32
    return %c0_i32, %c0_i32_0 : i32, i32
  }
  func.func @transform_4(%arg0: i32, %arg1: i32) -> (i32, i32) {
    %c0_i32 = arith.constant 0 : i32
    %c0_i32_0 = arith.constant 0 : i32
    %c0_i32_1 = arith.constant 0 : i32
    return %c0_i32, %c0_i32_0 : i32, i32
  }
  func.func @transform_5(%arg0: i32, %arg1: i32) -> (i32, i32) {
    %c0_i32 = arith.constant 0 : i32
    %c0_i32_0 = arith.constant 0 : i32
    return %arg0, %c0_i32 : i32, i32
  }
}

</mosaic_0001>

<bundles_post_ra>
// kernel: tpu_custom_call.1
= control target key start
LH: loop header
LB: loop body
LE: loop exit
PB: predicated region body
PF: predicated region fallthrough
CT: control target
= control target key end

     0   :  { %10 = vsyncpa [#allocation4], 0  ;;  %s1864_s0 = inlined_call_operand.hbm [shape: bf16[256,256], index: 0, kind: input, shape index: {}]   ;;  %s1865_s1 = inlined_call_operand.hbm [shape: bf16[256,128], index: 1, kind: input, shape index: {}]   ;;  %s1866_s2 = inlined_call_operand.hbm [shape: bf16[128,128], index: 2, kind: input, shape index: {}]   ;;  %s1867_s3 = inlined_call_operand.vmem [shape: f32[1,128], index: 3, kind: input, shape index: {}]   ;;  %s1868_s4 = inlined_call_operand.hbm [shape: bf16[128,128], index: 4, kind: input, shape index: {}]   ;;  %s1869_s5 = inlined_call_operand.hbm [shape: bf16[256,128], index: 5, kind: output, shape index: {}]  }
   0x1   :  { %11 = vsyncpa [#allocation7], 0 }
   0x2   :  { %12 = vsyncpa [#allocation10], 0  ;;  %s31_s20 = sshll.u32 %s1865_s1, 4  ;;  %s32_s20 = int_to_ptr.hbm [resolvable:$true] %s31_s20 }
   0x3   :  { %13 = vsyncpa [#allocation5], 0  ;;  %s1761_s21 = smov [#allocation6]   ;;  %s18_s25 = sshll.u32 %s1864_s0, 4  ;;  %s19_s25 = int_to_ptr.hbm [resolvable:$true] %s18_s25 }
   0x4   :  { %s33_s22 = sshll.u32 %s1761_s21, 4  ;;  %s1762_s26 = smov 64   ;;  %s34_s22 = int_to_ptr.vmem [resolvable:$true] %s33_s22 }
   0x5   :  { %s1763_s27 = smov 4   ;;  %s1764_s28 = smov [#allocation3]  }
   0x6   :  { %39 = dma.hbm_to_vmem [thread:$0]  %s32_s20, 2048, %s34_s22, [#allocation7], %s1762_s26, %s1762_s26, %s1763_s27  }
   0x7   :  { %s20_s29 = sshll.u32 %s1764_s28, 4  ;;  %s1765_s1 = smov 128   ;;  %s21_s29 = int_to_ptr.vmem [resolvable:$true] %s20_s29 }
   0x8   :  { %s1766_s30 = smov 8   ;;  %s44_s8 = sshll.u32 %s1866_s2, 4  ;;  %s45_s8 = int_to_ptr.hbm [resolvable:$true] %s44_s8 }
   0x9   :  { %26 = dma.hbm_to_vmem [thread:$0]  %s19_s25, 4096, %s21_s29, [#allocation4], %s1765_s1, %s1765_s1, %s1766_s30  }
   0xa   :  { %s1767_s9 = smov [#allocation8]   ;;  %s59_s12 = sshll.u32 %s1868_s4, 4  ;;  %s60_s12 = int_to_ptr.hbm [resolvable:$true] %s59_s12 }
   0xb   :  { %s46_s0 = sshll.u32 %s1767_s9, 4  ;;  %s1768_s13 = smov [#allocation9]   ;;  %s47_s0 = int_to_ptr.vmem [resolvable:$true] %s46_s0 }
   0xc   :  { %52 = dma.hbm_to_vmem [thread:$0]  %s45_s8, 1024, %s47_s0, [#allocation7], %s1762_s26, %s1762_s26, %s1763_s27  }
   0xd   :  { %s61_s14 = sshll.u32 %s1768_s13, 4  ;;  %s62_s14 = int_to_ptr.vmem [resolvable:$true] %s61_s14 }
   0xe   :  { %67 = dma.hbm_to_vmem [thread:$0]  %s60_s12, 1024, %s62_s14, [#allocation10], %s1762_s26, %s1762_s26, %s1763_s27  }
   0xf   :  { %1753 = dma.done.wait [#allocation4], 4096  }
  0x10   :  { %1754 = vsyncadd [#allocation4], 4294963200 }
  0x11   :  { %1755 = dma.done.wait [#allocation7], 3072  }
  0x12   :  { %1756 = vsyncadd [#allocation7], 4294964224 }
  0x13   :  { %1757 = dma.done.wait [#allocation10], 1024  }
  0x14   :  { %1758 = vsyncadd [#allocation10], 4294966272  ;;  %v1503_v0 = vld [vmem:[#allocation6 + $0x38] sm:$0xff]  ;;  %v1502_v2 = vld [vmem:[#allocation6 + $0x30] sm:$0xff]  ;;  %s1193_s18 = sshll.u32 %s1869_s5, 4  ;;  %s1194_s18 = int_to_ptr.hbm [resolvable:$true] %s1193_s18 }
  0x15   :  { %v1511_v1 = vld [vmem:[#allocation6 + $0x78] sm:$0xff]  ;;  %472 = vmatpush.bf16.msra.mxu0 %v1503_v0  ;;  %v1510_v3 = vld [vmem:[#allocation6 + $0x70] sm:$0xff]  ;;  %v1501_v4 = vld [vmem:[#allocation6 + $0x28] sm:$0xff] }
  0x16   :  { %561 = vmatpush.bf16.msra.mxu1 %v1511_v1  ;;  %v1509_v5 = vld [vmem:[#allocation6 + $0x68] sm:$0xff]  ;;  %v1500_v6 = vld [vmem:[#allocation6 + $0x20] sm:$0xff]  ;;  %v1499_v8 = vld [vmem:[#allocation6 + $0x18] sm:$0xff] }
  0x17   :  { %v1508_v7 = vld [vmem:[#allocation6 + $0x60] sm:$0xff]  ;;  %v1507_v9 = vld [vmem:[#allocation6 + $0x58] sm:$0xff]  ;;  %v1498_v10 = vld [vmem:[#allocation6 + $0x10] sm:$0xff] }
  0x18   :  { %v1506_v11 = vld [vmem:[#allocation6 + $0x50] sm:$0xff]  ;;  %v1497_v12 = vld [vmem:[#allocation6 + $0x8] sm:$0xff]  ;;  %v1496_v14 = vld [vmem:[#allocation6] sm:$0xff] }
  0x19   :  { %473 = vmatpush.bf16.msra.mxu0 %v1502_v2  ;;  %v1505_v13 = vld [vmem:[#allocation6 + $0x48] sm:$0xff]  ;;  %v1504_v15 = vld [vmem:[#allocation6 + $0x40] sm:$0xff]  ;;  %v1218_v22 = vld [vmem:[#allocation3 + $0x10] sm:$0xf] }
  0x1a   :  { %562 = vmatpush.bf16.msra.mxu1 %v1510_v3  ;;  %v1210_v16 = vld [vmem:[#allocation3] sm:$0xf]  ;;  %v1465_v17 = vld [vmem:[#allocation3 + $0x4] sm:$0xf0]  ;;  %v1464_v18 = vld [vmem:[#allocation3 + $0x4] sm:$0xf] }
  0x1b   :  { %v1212_v19 = vld [vmem:[#allocation3 + $0x8] sm:$0xf0]  ;;  %v1211_v20 = vor.u32 %v1465_v17, %v1210_v16  ;;  %v1467_v23 = vld [vmem:[#allocation3 + $0x14] sm:$0xf0]  ;;  %v1466_v24 = vld [vmem:[#allocation3 + $0x14] sm:$0xf] }
  0x1c   :  { %v1215_v21 = vor.u32 %v1464_v18, %v1212_v19  ;;  %v1220_v25 = vld [vmem:[#allocation3 + $0x18] sm:$0xf0]  ;;  %v1219_v26 = vor.u32 %v1467_v23, %v1218_v22  ;;  %v1226_v28 = vld [vmem:[#allocation3 + $0x20] sm:$0xf]  ;;  %v1469_v29 = vld [vmem:[#allocation3 + $0x24] sm:$0xf0] }
  0x1d   :  { %474 = vmatpush.bf16.msra.mxu0 %v1501_v4  ;;  %v1223_v27 = vor.u32 %v1466_v24, %v1220_v25  ;;  %v1468_v30 = vld [vmem:[#allocation3 + $0x24] sm:$0xf]  ;;  %v1228_v31 = vld [vmem:[#allocation3 + $0x28] sm:$0xf0]  ;;  %v1227_v32 = vor.u32 %v1469_v29, %v1226_v28  ;;  %v1234_v34 = vld [vmem:[#allocation3 + $0x30] sm:$0xf] }
  0x1e   :  { %563 = vmatpush.bf16.msra.mxu1 %v1509_v5  ;;  %v1231_v33 = vor.u32 %v1468_v30, %v1228_v31  ;;  %v1471_v35 = vld [vmem:[#allocation3 + $0x34] sm:$0xf0]  ;;  %v1470_v36 = vld [vmem:[#allocation3 + $0x34] sm:$0xf]  ;;  %v1236_v37 = vld [vmem:[#allocation3 + $0x38] sm:$0xf0] }
  0x1f   :  { %v1235_v38 = vor.u32 %v1471_v35, %v1234_v34  ;;  %v1239_v39 = vor.u32 %v1470_v36, %v1236_v37  ;;  %v1242_v40 = vld [vmem:[#allocation3 + $0x40] sm:$0xf]  ;;  %v1473_v41 = vld [vmem:[#allocation3 + $0x44] sm:$0xf0]  ;;  %v1472_v42 = vld [vmem:[#allocation3 + $0x44] sm:$0xf] }
  0x20   :  { %v1244_v43 = vld [vmem:[#allocation3 + $0x48] sm:$0xf0]  ;;  %v1243_v44 = vor.u32 %v1473_v41, %v1242_v40  ;;  %v1519_v46 = vld [vmem:[#allocation8 + $0x38] sm:$0xff]  ;;  %v1518_v47 = vld [vmem:[#allocation8 + $0x30] sm:$0xff] }
  0x21   :  { %475 = vmatpush.bf16.msra.mxu0 %v1500_v6  ;;  %v1247_v45 = vor.u32 %v1472_v42, %v1244_v43  ;;  %833 = vmatpush.bf16.msra.mxu2 %v1519_v46  ;;  %v1250_v48 = vld [vmem:[#allocation3 + $0x50] sm:$0xf]  ;;  %v1475_v49 = vld [vmem:[#allocation3 + $0x54] sm:$0xf0]  ;;  %v1474_v50 = vld [vmem:[#allocation3 + $0x54] sm:$0xf] }
  0x22   :  { %564 = vmatpush.bf16.msra.mxu1 %v1508_v7  ;;  %v1252_v51 = vld [vmem:[#allocation3 + $0x58] sm:$0xf0]  ;;  %v1251_v52 = vor.u32 %v1475_v49, %v1250_v48  ;;  %v1517_v54 = vld [vmem:[#allocation8 + $0x28] sm:$0xff]  ;;  %v1516_v55 = vld [vmem:[#allocation8 + $0x20] sm:$0xff] }
  0x23   :  { %v1255_v53 = vor.u32 %v1474_v50, %v1252_v51  ;;  %v1515_v56 = vld [vmem:[#allocation8 + $0x18] sm:$0xff]  ;;  %v1258_v57 = vld [vmem:[#allocation3 + $0x60] sm:$0xf]  ;;  %v1477_v58 = vld [vmem:[#allocation3 + $0x64] sm:$0xf0] }
  0x24   :  { %v1476_v59 = vld [vmem:[#allocation3 + $0x64] sm:$0xf]  ;;  %v1260_v60 = vld [vmem:[#allocation3 + $0x68] sm:$0xf0]  ;;  %v1259_v61 = vor.u32 %v1477_v58, %v1258_v57  ;;  %v1514_v63 = vld [vmem:[#allocation8 + $0x10] sm:$0xff] }
  0x25   :  { %476 = vmatpush.bf16.msra.mxu0 %v1499_v8  ;;  %834 = vmatpush.bf16.msra.mxu2 %v1518_v47  ;;  %v1263_v62 = vor.u32 %v1476_v59, %v1260_v60  ;;  %v1513_v0 = vld [vmem:[#allocation8 + $0x8] sm:$0xff]  ;;  %v1512_v1 = vld [vmem:[#allocation8] sm:$0xff]  ;;  %v1266_v2 = vld [vmem:[#allocation3 + $0x70] sm:$0xf] }
  0x26   :  { %565 = vmatpush.bf16.msra.mxu1 %v1507_v9  ;;  %v1479_v3 = vld [vmem:[#allocation3 + $0x74] sm:$0xf0]  ;;  %v1478_v4 = vld [vmem:[#allocation3 + $0x74] sm:$0xf]  ;;  %v1268_v5 = vld [vmem:[#allocation3 + $0x78] sm:$0xf0] }
  0x27   :  { %v1267_v6 = vor.u32 %v1479_v3, %v1266_v2  ;;  %v1271_v7 = vor.u32 %v1478_v4, %v1268_v5  ;;  %v1274_v8 = vld [vmem:[#allocation3 + $0x80] sm:$0xf]  ;;  %v1481_v9 = vld [vmem:[#allocation3 + $0x84] sm:$0xf0]  ;;  %v1483_v22 = vld [vmem:[#allocation3 + $0x94] sm:$0xf0] }
  0x28   :  { %v1482_v23 = vld [vmem:[#allocation3 + $0x94] sm:$0xf]  ;;  %v1284_v24 = vld [vmem:[#allocation3 + $0x98] sm:$0xf0]  ;;  %v1290_v34 = vld [vmem:[#allocation3 + $0xa0] sm:$0xf] }
  0x29   :  { %477 = vmatpush.bf16.msra.mxu0 %v1498_v10  ;;  %835 = vmatpush.bf16.msra.mxu2 %v1517_v54  ;;  %v1480_v10 = vld [vmem:[#allocation3 + $0x84] sm:$0xf]  ;;  %v1485_v35 = vld [vmem:[#allocation3 + $0xa4] sm:$0xf0]  ;;  %v1292_v37 = vld [vmem:[#allocation3 + $0xa8] sm:$0xf0] }
  0x2a   :  { %566 = vmatpush.bf16.msra.mxu1 %v1506_v11  ;;  %v1276_v11 = vld [vmem:[#allocation3 + $0x88] sm:$0xf0]  ;;  %v1484_v36 = vld [vmem:[#allocation3 + $0xa4] sm:$0xf]  ;;  %v1298_v47 = vld [vmem:[#allocation3 + $0xb0] sm:$0xf] }
  0x2b   :  { %v1487_v48 = vld [vmem:[#allocation3 + $0xb4] sm:$0xf0]  ;;  %v1486_v49 = vld [vmem:[#allocation3 + $0xb4] sm:$0xf]  ;;  %v1300_v50 = vld [vmem:[#allocation3 + $0xb8] sm:$0xf0] }
  0x2c   :  { %v1299_v51 = vor.u32 %v1487_v48, %v1298_v47  ;;  %v1306_v60 = vld [vmem:[#allocation3 + $0xc0] sm:$0xf]  ;;  %v1522_v48 = vld [vmem:[#allocation9 + $0x10] sm:$0xff] }
  0x2d   :  { %478 = vmatpush.bf16.msra.mxu0 %v1497_v12  ;;  %836 = vmatpush.bf16.msra.mxu2 %v1516_v55  ;;  %v1275_v12 = vor.u32 %v1481_v9, %v1274_v8  ;;  %v1314_v9 = vld [vmem:[#allocation3 + $0xd0] sm:$0xf] }
  0x2e   :  { %567 = vmatpush.bf16.msra.mxu1 %v1505_v13  ;;  %v1279_v13 = vor.u32 %v1480_v10, %v1276_v11  ;;  %v1491_v10 = vld [vmem:[#allocation3 + $0xd4] sm:$0xf0]  ;;  %v1490_v11 = vld [vmem:[#allocation3 + $0xd4] sm:$0xf] }
  0x31   :  { %479 = vmatpush.bf16.msra.mxu0 %v1496_v14  ;;  %837 = vmatpush.bf16.msra.mxu2 %v1515_v56 }
  0x32   :  { %568 = vmatpush.bf16.msra.mxu1 %v1504_v15 }
  0x34   :  { %480 = vmatmul.bf16.vlgmr.msra.gmra.mxu0 %v1211_v20 }
  0x35   :  { %569 = vmatmul.bf16.vlgmr.msra.gmra.mxu1 %v1215_v21  ;;  %838 = vmatpush.bf16.msra.mxu2 %v1514_v63  ;;  %v1282_v21 = vld [vmem:[#allocation3 + $0x90] sm:$0xf]  ;;  %v1308_v63 = vld [vmem:[#allocation3 + $0xc8] sm:$0xf0] }
  0x36   :  { %v1283_v25 = vor.u32 %v1483_v22, %v1282_v21  ;;  %v1322_v22 = vld [vmem:[#allocation3 + $0xe0] sm:$0xf] }
  0x39   :  { %839 = vmatpush.bf16.msra.mxu2 %v1513_v0 }
  0x3d   :  { %840 = vmatpush.bf16.msra.mxu2 %v1512_v1 }
  0x44   :  { %485 = vmatmul.bf16.gmra.mxu0 %v1219_v26  ;;  %v1287_v26 = vor.u32 %v1482_v23, %v1284_v24  ;;  %v1493_v23 = vld [vmem:[#allocation3 + $0xe4] sm:$0xf0]  ;;  %v1492_v24 = vld [vmem:[#allocation3 + $0xe4] sm:$0xf] }
  0x45   :  { %574 = vmatmul.bf16.gmra.mxu1 %v1223_v27 }
  0x54   :  { %490 = vmatmul.bf16.gmra.mxu0 %v1227_v32 }
  0x55   :  { %579 = vmatmul.bf16.gmra.mxu1 %v1231_v33 }
  0x64   :  { %495 = vmatmul.bf16.gmra.mxu0 %v1235_v38  ;;  %v1291_v38 = vor.u32 %v1485_v35, %v1290_v34 }
  0x65   :  { %584 = vmatmul.bf16.gmra.mxu1 %v1239_v39  ;;  %v1295_v39 = vor.u32 %v1484_v36, %v1292_v37  ;;  %v1524_v37 = vld [vmem:[#allocation9 + $0x20] sm:$0xff] }
  0x74   :  { %500 = vmatmul.bf16.gmra.mxu0 %v1243_v44 }
  0x75   :  { %589 = vmatmul.bf16.gmra.mxu1 %v1247_v45 }
  0x84   :  { %505 = vmatmul.bf16.gmra.mxu0 %v1251_v52  ;;  %v1303_v52 = vor.u32 %v1486_v49, %v1300_v50  ;;  %v1521_v49 = vld [vmem:[#allocation9 + $0x8] sm:$0xff] }
  0x85   :  { %594 = vmatmul.bf16.gmra.mxu1 %v1255_v53 }
  0x94   :  { %510 = vmatmul.bf16.gmra.mxu0 %v1259_v61  ;;  %v1489_v61 = vld [vmem:[#allocation3 + $0xc4] sm:$0xf0] }
  0x95   :  { %599 = vmatmul.bf16.gmra.mxu1 %v1263_v62  ;;  %v1488_v62 = vld [vmem:[#allocation3 + $0xc4] sm:$0xf]  ;;  %v1307_v0 = vor.u32 %v1489_v61, %v1306_v60 }
  0x96   :  { %v1311_v1 = vor.u32 %v1488_v62, %v1308_v63 }
  0xa4   :  { %515 = vmatmul.bf16.gmra.mxu0 %v1267_v6 }
  0xa5   :  { %604 = vmatmul.bf16.gmra.mxu1 %v1271_v7 }
  0xb1   :  { %v481_v14 = vpop.f32.mrf.mxu0 }
  0xb2   :  { %v570_v15 = vpop.f32.mrf.mxu1 }
  0xb3   :  { %v571_v18 = vadd.f32 %v570_v15, %v481_v14 }
  0xb4   :  { %520 = vmatmul.bf16.gmra.mxu0 %v1275_v12  ;;  %v1316_v12 = vld [vmem:[#allocation3 + $0xd8] sm:$0xf0] }
  0xb5   :  { %609 = vmatmul.bf16.gmra.mxu1 %v1279_v13  ;;  %v1315_v13 = vor.u32 %v1491_v10, %v1314_v9  ;;  %v1319_v14 = vor.u32 %v1490_v11, %v1316_v12 }
  0xb9   :  { %v483_v16 = vpop.f32.mrf.mxu0 }
  0xba   :  { %v572_v17 = vpop.f32.mrf.mxu1 }
  0xbb   :  { %v573_v19 = vadd.f32 %v572_v17, %v483_v16 }
  0xbd   :  { %v749_v20 = vpack.c.bf16 %v573_v19, %v571_v18 }
  0xbf   :  { %841 = vmatmul.bf16.vlgmr.msra.gmra.mxu2 %v749_v20 }
  0xc1   :  { %v486_v27 = vpop.f32.mrf.mxu0 }
  0xc2   :  { %v575_v28 = vpop.f32.mrf.mxu1 }
  0xc3   :  { %v576_v31 = vadd.f32 %v575_v28, %v486_v27  ;;  %v1323_v27 = vor.u32 %v1493_v23, %v1322_v22 }
  0xc4   :  { %525 = vmatmul.bf16.gmra.mxu0 %v1283_v25  ;;  %v1324_v25 = vld [vmem:[#allocation3 + $0xe8] sm:$0xf0] }
  0xc5   :  { %614 = vmatmul.bf16.gmra.mxu1 %v1287_v26  ;;  %v1527_v26 = vld [vmem:[#allocation9 + $0x38] sm:$0xff]  ;;  %v1327_v28 = vor.u32 %v1492_v24, %v1324_v25 }
  0xc6   :  { %1034 = vmatpush.bf16.msra.mxu3 %v1527_v26 }
  0xc9   :  { %v488_v29 = vpop.f32.mrf.mxu0 }
  0xca   :  { %v577_v30 = vpop.f32.mrf.mxu1 }
  0xcb   :  { %v578_v32 = vadd.f32 %v577_v30, %v488_v29 }
  0xcd   :  { %v750_v33 = vpack.c.bf16 %v578_v32, %v576_v31  ;;  %v1526_v31 = vld [vmem:[#allocation9 + $0x30] sm:$0xff]  ;;  %v1525_v32 = vld [vmem:[#allocation9 + $0x28] sm:$0xff] }
  0xce   :  { %1035 = vmatpush.bf16.msra.mxu3 %v1526_v31 }
  0xcf   :  { %846 = vmatmul.bf16.gmra.mxu2 %v750_v33 }
  0xd1   :  { %v491_v40 = vpop.f32.mrf.mxu0 }
  0xd2   :  { %v580_v41 = vpop.f32.mrf.mxu1  ;;  %1036 = vmatpush.bf16.msra.mxu3 %v1525_v32 }
  0xd3   :  { %v581_v44 = vadd.f32 %v580_v41, %v491_v40  ;;  %v1495_v40 = vld [vmem:[#allocation3 + $0xf4] sm:$0xf0]  ;;  %v1494_v41 = vld [vmem:[#allocation3 + $0xf4] sm:$0xf] }
  0xd4   :  { %530 = vmatmul.bf16.gmra.mxu0 %v1291_v38 }
  0xd5   :  { %619 = vmatmul.bf16.gmra.mxu1 %v1295_v39  ;;  %v1330_v39 = vld [vmem:[#allocation3 + $0xf0] sm:$0xf] }
  0xd6   :  { %1037 = vmatpush.bf16.msra.mxu3 %v1524_v37 }
  0xd9   :  { %v493_v42 = vpop.f32.mrf.mxu0 }
  0xda   :  { %v582_v43 = vpop.f32.mrf.mxu1 }
  0xdb   :  { %v583_v45 = vadd.f32 %v582_v43, %v493_v42  ;;  %v1332_v42 = vld [vmem:[#allocation3 + $0xf8] sm:$0xf0]  ;;  %v1331_v43 = vor.u32 %v1495_v40, %v1330_v39 }
  0xdd   :  { %v751_v46 = vpack.c.bf16 %v583_v45, %v581_v44  ;;  %v1335_v44 = vor.u32 %v1494_v41, %v1332_v42  ;;  %v1523_v45 = vld [vmem:[#allocation9 + $0x18] sm:$0xff] }
  0xde   :  { %1038 = vmatpush.bf16.msra.mxu3 %v1523_v45 }
  0xdf   :  { %851 = vmatmul.bf16.gmra.mxu2 %v751_v46 }
  0xe1   :  { %v496_v53 = vpop.f32.mrf.mxu0 }
  0xe2   :  { %v585_v54 = vpop.f32.mrf.mxu1  ;;  %1039 = vmatpush.bf16.msra.mxu3 %v1522_v48 }
  0xe3   :  { %v586_v57 = vadd.f32 %v585_v54, %v496_v53 }
  0xe4   :  { %535 = vmatmul.bf16.gmra.mxu0 %v1299_v51 }
  0xe5   :  { %624 = vmatmul.bf16.gmra.mxu1 %v1303_v52 }
  0xe6   :  { %1040 = vmatpush.bf16.msra.mxu3 %v1521_v49 }
  0xe9   :  { %v498_v55 = vpop.f32.mrf.mxu0 }
  0xea   :  { %v587_v56 = vpop.f32.mrf.mxu1 }
  0xeb   :  { %v588_v58 = vadd.f32 %v587_v56, %v498_v55  ;;  %v1520_v55 = vld [vmem:[#allocation9] sm:$0xff] }
  0xec   :  { %1041 = vmatpush.bf16.msra.mxu3 %v1520_v55 }
  0xed   :  { %v752_v59 = vpack.c.bf16 %v588_v58, %v586_v57 }
  0xef   :  { %856 = vmatmul.bf16.gmra.mxu2 %v752_v59 }
  0xf1   :  { %v501_v2 = vpop.f32.mrf.mxu0 }
  0xf2   :  { %v590_v3 = vpop.f32.mrf.mxu1 }
  0xf3   :  { %v591_v6 = vadd.f32 %v590_v3, %v501_v2  ;;  %v1824_v2 = vld [vmem:[%s1867_s3] ss:$0 sm:$0xff]  ;;  %s1769_s3 = smov [#allocation11]  }
  0xf4   :  { %540 = vmatmul.bf16.gmra.mxu0 %v1307_v0  ;;  %s1191_s15 = sshll.u32 %s1769_s3, 4  ;;  %s1192_s15 = int_to_ptr.vmem [resolvable:$true] %s1191_s15 }
  0xf5   :  { %629 = vmatmul.bf16.gmra.mxu1 %v1311_v1 }
  0xf9   :  { %v503_v4 = vpop.f32.mrf.mxu0 }
  0xfa   :  { %v592_v5 = vpop.f32.mrf.mxu1 }
  0xfb   :  { %v593_v7 = vadd.f32 %v592_v5, %v503_v4 }
  0xfd   :  { %v753_v8 = vpack.c.bf16 %v593_v7, %v591_v6 }
  0xff   :  { %861 = vmatmul.bf16.gmra.mxu2 %v753_v8 }
 0x101   :  { %v506_v15 = vpop.f32.mrf.mxu0 }
 0x102   :  { %v595_v16 = vpop.f32.mrf.mxu1 }
 0x103   :  { %v596_v19 = vadd.f32 %v595_v16, %v506_v15 }
 0x104   :  { %545 = vmatmul.bf16.gmra.mxu0 %v1315_v13 }
 0x105   :  { %634 = vmatmul.bf16.gmra.mxu1 %v1319_v14 }
 0x109   :  { %v508_v17 = vpop.f32.mrf.mxu0 }
 0x10a   :  { %v597_v18 = vpop.f32.mrf.mxu1 }
 0x10b   :  { %v598_v20 = vadd.f32 %v597_v18, %v508_v17 }
 0x10d   :  { %v754_v21 = vpack.c.bf16 %v598_v20, %v596_v19 }
 0x10f   :  { %866 = vmatmul.bf16.gmra.mxu2 %v754_v21 }
 0x111   :  { %v511_v29 = vpop.f32.mrf.mxu0 }
 0x112   :  { %v600_v30 = vpop.f32.mrf.mxu1 }
 0x113   :  { %v601_v35 = vadd.f32 %v600_v30, %v511_v29 }
 0x114   :  { %550 = vmatmul.bf16.gmra.mxu0 %v1323_v27 }
 0x115   :  { %639 = vmatmul.bf16.gmra.mxu1 %v1327_v28 }
 0x119   :  { %v513_v33 = vpop.f32.mrf.mxu0 }
 0x11a   :  { %v602_v34 = vpop.f32.mrf.mxu1 }
 0x11b   :  { %v603_v36 = vadd.f32 %v602_v34, %v513_v33 }
 0x11d   :  { %v755_v38 = vpack.c.bf16 %v603_v36, %v601_v35 }
 0x11f   :  { %871 = vmatmul.bf16.gmra.mxu2 %v755_v38 }
 0x121   :  { %v516_v46 = vpop.f32.mrf.mxu0 }
 0x122   :  { %v605_v47 = vpop.f32.mrf.mxu1 }
 0x123   :  { %v606_v52 = vadd.f32 %v605_v47, %v516_v46 }
 0x124   :  { %555 = vmatmul.bf16.gmra.mxu0 %v1331_v43 }
 0x125   :  { %644 = vmatmul.bf16.gmra.mxu1 %v1335_v44 }
 0x129   :  { %v518_v50 = vpop.f32.mrf.mxu0 }
 0x12a   :  { %v607_v51 = vpop.f32.mrf.mxu1 }
 0x12b   :  { %v608_v53 = vadd.f32 %v607_v51, %v518_v50 }
 0x12d   :  { %v756_v54 = vpack.c.bf16 %v608_v53, %v606_v52 }
 0x12f   :  { %876 = vmatmul.bf16.gmra.mxu2 %v756_v54 }
 0x131   :  { %v521_v56 = vpop.f32.mrf.mxu0 }
 0x132   :  { %v610_v57 = vpop.f32.mrf.mxu1 }
 0x133   :  { %v611_v60 = vadd.f32 %v610_v57, %v521_v56 }
 0x139   :  { %v523_v58 = vpop.f32.mrf.mxu0 }
 0x13a   :  { %v612_v59 = vpop.f32.mrf.mxu1 }
 0x13b   :  { %v613_v61 = vadd.f32 %v612_v59, %v523_v58 }
 0x13d   :  { %v757_v62 = vpack.c.bf16 %v613_v61, %v611_v60 }
 0x13f   :  { %881 = vmatmul.bf16.gmra.mxu2 %v757_v62 }
 0x141   :  { %v526_v63 = vpop.f32.mrf.mxu0 }
 0x142   :  { %v615_v0 = vpop.f32.mrf.mxu1  ;;  %v842_v1 = vpop.f32.mrf.mxu2 }
 0x143   :  { %v843_v3 = vadd.f32 %v1824_v2, %v842_v1  ;;  %v616_v6 = vadd.f32 %v615_v0, %v526_v63 }
 0x145   :  { %v922_v11 = vmax.f32 %v843_v3, 0.0 }
 0x149   :  { %v528_v4 = vpop.f32.mrf.mxu0 }
 0x14a   :  { %v617_v5 = vpop.f32.mrf.mxu1  ;;  %v844_v8 = vpop.f32.mrf.mxu2 }
 0x14b   :  { %v618_v7 = vadd.f32 %v617_v5, %v528_v4  ;;  %v845_v9 = vadd.f32 %v1824_v2, %v844_v8 }
 0x14d   :  { %v758_v10 = vpack.c.bf16 %v618_v7, %v616_v6  ;;  %v923_v12 = vmax.f32 %v845_v9, 0.0 }
 0x14f   :  { %886 = vmatmul.bf16.gmra.mxu2 %v758_v10  ;;  %v954_v13 = vpack.c.bf16 %v923_v12, %v922_v11 }
 0x151   :  { %1042 = vmatmul.bf16.vlgmr.msra.gmra.mxu3 %v954_v13  ;;  %v531_v14 = vpop.f32.mrf.mxu0 }
 0x152   :  { %v620_v15 = vpop.f32.mrf.mxu1  ;;  %v847_v16 = vpop.f32.mrf.mxu2 }
 0x153   :  { %v848_v17 = vadd.f32 %v1824_v2, %v847_v16  ;;  %v621_v20 = vadd.f32 %v620_v15, %v531_v14 }
 0x155   :  { %v924_v25 = vmax.f32 %v848_v17, 0.0 }
 0x159   :  { %v533_v18 = vpop.f32.mrf.mxu0 }
 0x15a   :  { %v622_v19 = vpop.f32.mrf.mxu1  ;;  %v849_v22 = vpop.f32.mrf.mxu2 }
 0x15b   :  { %v623_v21 = vadd.f32 %v622_v19, %v533_v18  ;;  %v850_v23 = vadd.f32 %v1824_v2, %v849_v22 }
 0x15d   :  { %v759_v24 = vpack.c.bf16 %v623_v21, %v621_v20  ;;  %v925_v26 = vmax.f32 %v850_v23, 0.0 }
 0x15f   :  { %891 = vmatmul.bf16.gmra.mxu2 %v759_v24  ;;  %v955_v27 = vpack.c.bf16 %v925_v26, %v924_v25 }
 0x161   :  { %1047 = vmatmul.bf16.gmra.mxu3 %v955_v27  ;;  %v536_v28 = vpop.f32.mrf.mxu0 }
 0x162   :  { %v625_v29 = vpop.f32.mrf.mxu1  ;;  %v852_v30 = vpop.f32.mrf.mxu2 }
 0x163   :  { %v853_v31 = vadd.f32 %v1824_v2, %v852_v30  ;;  %v626_v34 = vadd.f32 %v625_v29, %v536_v28 }
 0x165   :  { %v926_v39 = vmax.f32 %v853_v31, 0.0 }
 0x169   :  { %v538_v32 = vpop.f32.mrf.mxu0 }
 0x16a   :  { %v627_v33 = vpop.f32.mrf.mxu1  ;;  %v854_v36 = vpop.f32.mrf.mxu2 }
 0x16b   :  { %v628_v35 = vadd.f32 %v627_v33, %v538_v32  ;;  %v855_v37 = vadd.f32 %v1824_v2, %v854_v36 }
 0x16d   :  { %v760_v38 = vpack.c.bf16 %v628_v35, %v626_v34  ;;  %v927_v40 = vmax.f32 %v855_v37, 0.0 }
 0x16f   :  { %896 = vmatmul.bf16.gmra.mxu2 %v760_v38  ;;  %v956_v41 = vpack.c.bf16 %v927_v40, %v926_v39 }
 0x171   :  { %1052 = vmatmul.bf16.gmra.mxu3 %v956_v41  ;;  %v541_v42 = vpop.f32.mrf.mxu0 }
 0x172   :  { %v630_v43 = vpop.f32.mrf.mxu1  ;;  %v857_v44 = vpop.f32.mrf.mxu2 }
 0x173   :  { %v858_v45 = vadd.f32 %v1824_v2, %v857_v44  ;;  %v631_v48 = vadd.f32 %v630_v43, %v541_v42 }
 0x175   :  { %v928_v53 = vmax.f32 %v858_v45, 0.0 }
 0x179   :  { %v543_v46 = vpop.f32.mrf.mxu0 }
 0x17a   :  { %v632_v47 = vpop.f32.mrf.mxu1  ;;  %v859_v50 = vpop.f32.mrf.mxu2 }
 0x17b   :  { %v633_v49 = vadd.f32 %v632_v47, %v543_v46  ;;  %v860_v51 = vadd.f32 %v1824_v2, %v859_v50 }
 0x17d   :  { %v761_v52 = vpack.c.bf16 %v633_v49, %v631_v48  ;;  %v929_v54 = vmax.f32 %v860_v51, 0.0 }
 0x17f   :  { %901 = vmatmul.bf16.gmra.mxu2 %v761_v52  ;;  %v957_v55 = vpack.c.bf16 %v929_v54, %v928_v53 }
 0x181   :  { %1057 = vmatmul.bf16.gmra.mxu3 %v957_v55  ;;  %v546_v56 = vpop.f32.mrf.mxu0 }
 0x182   :  { %v635_v57 = vpop.f32.mrf.mxu1  ;;  %v862_v58 = vpop.f32.mrf.mxu2 }
 0x183   :  { %v863_v59 = vadd.f32 %v1824_v2, %v862_v58  ;;  %v636_v62 = vadd.f32 %v635_v57, %v546_v56 }
 0x185   :  { %v930_v4 = vmax.f32 %v863_v59, 0.0 }
 0x189   :  { %v548_v60 = vpop.f32.mrf.mxu0 }
 0x18a   :  { %v637_v61 = vpop.f32.mrf.mxu1  ;;  %v864_v0 = vpop.f32.mrf.mxu2 }
 0x18b   :  { %v638_v63 = vadd.f32 %v637_v61, %v548_v60  ;;  %v865_v1 = vadd.f32 %v1824_v2, %v864_v0 }
 0x18d   :  { %v762_v3 = vpack.c.bf16 %v638_v63, %v636_v62  ;;  %v931_v5 = vmax.f32 %v865_v1, 0.0 }
 0x18f   :  { %906 = vmatmul.bf16.gmra.mxu2 %v762_v3  ;;  %v958_v6 = vpack.c.bf16 %v931_v5, %v930_v4 }
 0x191   :  { %1062 = vmatmul.bf16.gmra.mxu3 %v958_v6  ;;  %v551_v7 = vpop.f32.mrf.mxu0 }
 0x192   :  { %v640_v8 = vpop.f32.mrf.mxu1  ;;  %v867_v9 = vpop.f32.mrf.mxu2 }
 0x193   :  { %v868_v10 = vadd.f32 %v1824_v2, %v867_v9  ;;  %v641_v13 = vadd.f32 %v640_v8, %v551_v7 }
 0x195   :  { %v932_v18 = vmax.f32 %v868_v10, 0.0 }
 0x199   :  { %v553_v11 = vpop.f32.mrf.mxu0 }
 0x19a   :  { %v642_v12 = vpop.f32.mrf.mxu1  ;;  %v869_v15 = vpop.f32.mrf.mxu2 }
 0x19b   :  { %v643_v14 = vadd.f32 %v642_v12, %v553_v11  ;;  %v870_v16 = vadd.f32 %v1824_v2, %v869_v15 }
 0x19d   :  { %v763_v17 = vpack.c.bf16 %v643_v14, %v641_v13  ;;  %v933_v19 = vmax.f32 %v870_v16, 0.0 }
 0x19f   :  { %911 = vmatmul.bf16.gmra.mxu2 %v763_v17  ;;  %v959_v20 = vpack.c.bf16 %v933_v19, %v932_v18 }
 0x1a1   :  { %1067 = vmatmul.bf16.gmra.mxu3 %v959_v20  ;;  %v556_v21 = vpop.f32.mrf.mxu0 }
 0x1a2   :  { %v645_v22 = vpop.f32.mrf.mxu1  ;;  %v872_v23 = vpop.f32.mrf.mxu2 }
 0x1a3   :  { %v873_v24 = vadd.f32 %v1824_v2, %v872_v23  ;;  %v646_v27 = vadd.f32 %v645_v22, %v556_v21 }
 0x1a5   :  { %v934_v32 = vmax.f32 %v873_v24, 0.0 }
 0x1a9   :  { %v558_v25 = vpop.f32.mrf.mxu0 }
 0x1aa   :  { %v647_v26 = vpop.f32.mrf.mxu1  ;;  %v874_v29 = vpop.f32.mrf.mxu2 }
 0x1ab   :  { %v648_v28 = vadd.f32 %v647_v26, %v558_v25  ;;  %v875_v30 = vadd.f32 %v1824_v2, %v874_v29 }
 0x1ad   :  { %v764_v31 = vpack.c.bf16 %v648_v28, %v646_v27  ;;  %v935_v33 = vmax.f32 %v875_v30, 0.0 }
 0x1af   :  { %916 = vmatmul.bf16.gmra.mxu2 %v764_v31  ;;  %v960_v34 = vpack.c.bf16 %v935_v33, %v934_v32 }
 0x1b1   :  { %1072 = vmatmul.bf16.gmra.mxu3 %v960_v34 }
 0x1b2   :  { %v877_v35 = vpop.f32.mrf.mxu2 }
 0x1b3   :  { %v878_v36 = vadd.f32 %v1824_v2, %v877_v35 }
 0x1b5   :  { %v936_v39 = vmax.f32 %v878_v36, 0.0 }
 0x1ba   :  { %v879_v37 = vpop.f32.mrf.mxu2 }
 0x1bb   :  { %v880_v38 = vadd.f32 %v1824_v2, %v879_v37 }
 0x1bd   :  { %v937_v40 = vmax.f32 %v880_v38, 0.0 }
 0x1bf   :  { %v961_v41 = vpack.c.bf16 %v937_v40, %v936_v39 }
 0x1c1   :  { %1077 = vmatmul.bf16.gmra.mxu3 %v961_v41 }
 0x1c2   :  { %v882_v42 = vpop.f32.mrf.mxu2 }
 0x1c3   :  { %v883_v43 = vadd.f32 %v1824_v2, %v882_v42 }
 0x1c5   :  { %v938_v46 = vmax.f32 %v883_v43, 0.0 }
 0x1ca   :  { %v884_v44 = vpop.f32.mrf.mxu2 }
 0x1cb   :  { %v885_v45 = vadd.f32 %v1824_v2, %v884_v44 }
 0x1cd   :  { %v939_v47 = vmax.f32 %v885_v45, 0.0 }
 0x1cf   :  { %v962_v48 = vpack.c.bf16 %v939_v47, %v938_v46 }
 0x1d1   :  { %1082 = vmatmul.bf16.gmra.mxu3 %v962_v48 }
 0x1d2   :  { %v887_v49 = vpop.f32.mrf.mxu2 }
 0x1d3   :  { %v888_v51 = vadd.f32 %v1824_v2, %v887_v49 }
 0x1d4   :  { %v1043_v50 = vpop.f32.mrf.mxu3 }
 0x1d5   :  { %v940_v55 = vmax.f32 %v888_v51, 0.0 }
 0x1da   :  { %v889_v52 = vpop.f32.mrf.mxu2 }
 0x1db   :  { %v890_v53 = vadd.f32 %v1824_v2, %v889_v52 }
 0x1dc   :  { %v1045_v54 = vpop.f32.mrf.mxu3 }
 0x1dd   :  { %v941_v56 = vmax.f32 %v890_v53, 0.0  ;;  %v1531_v57 = vpack.c.bf16 %v1045_v54, %v1043_v50 }
 0x1df   :  { %1532 = vst [vmem:[#allocation11] sm:$0xff] %v1531_v57   ;;  %v963_v58 = vpack.c.bf16 %v941_v56, %v940_v55 }
 0x1e1   :  { %1087 = vmatmul.bf16.gmra.mxu3 %v963_v58 }
 0x1e2   :  { %v892_v59 = vpop.f32.mrf.mxu2 }
 0x1e3   :  { %v893_v61 = vadd.f32 %v1824_v2, %v892_v59 }
 0x1e4   :  { %v1048_v60 = vpop.f32.mrf.mxu3 }
 0x1e5   :  { %v942_v1 = vmax.f32 %v893_v61, 0.0 }
 0x1ea   :  { %v894_v62 = vpop.f32.mrf.mxu2 }
 0x1eb   :  { %v895_v63 = vadd.f32 %v1824_v2, %v894_v62 }
 0x1ec   :  { %v1050_v0 = vpop.f32.mrf.mxu3 }
 0x1ed   :  { %v943_v3 = vmax.f32 %v895_v63, 0.0  ;;  %v1536_v4 = vpack.c.bf16 %v1050_v0, %v1048_v60 }
 0x1ef   :  { %1608 = vst [vmem:[#allocation11 + $0x8] sm:$0xff] %v1536_v4   ;;  %v964_v5 = vpack.c.bf16 %v943_v3, %v942_v1 }
 0x1f1   :  { %1092 = vmatmul.bf16.gmra.mxu3 %v964_v5 }
 0x1f2   :  { %v897_v6 = vpop.f32.mrf.mxu2 }
 0x1f3   :  { %v898_v8 = vadd.f32 %v1824_v2, %v897_v6 }
 0x1f4   :  { %v1053_v7 = vpop.f32.mrf.mxu3 }
 0x1f5   :  { %v944_v12 = vmax.f32 %v898_v8, 0.0 }
 0x1fa   :  { %v899_v9 = vpop.f32.mrf.mxu2 }
 0x1fb   :  { %v900_v10 = vadd.f32 %v1824_v2, %v899_v9 }
 0x1fc   :  { %v1055_v11 = vpop.f32.mrf.mxu3 }
 0x1fd   :  { %v945_v13 = vmax.f32 %v900_v10, 0.0  ;;  %v1541_v14 = vpack.c.bf16 %v1055_v11, %v1053_v7 }
 0x1ff   :  { %1609 = vst [vmem:[#allocation11 + $0x10] sm:$0xff] %v1541_v14   ;;  %v965_v15 = vpack.c.bf16 %v945_v13, %v944_v12 }
 0x201   :  { %1097 = vmatmul.bf16.gmra.mxu3 %v965_v15 }
 0x202   :  { %v902_v16 = vpop.f32.mrf.mxu2 }
 0x203   :  { %v903_v18 = vadd.f32 %v1824_v2, %v902_v16 }
 0x204   :  { %v1058_v17 = vpop.f32.mrf.mxu3 }
 0x205   :  { %v946_v22 = vmax.f32 %v903_v18, 0.0 }
 0x20a   :  { %v904_v19 = vpop.f32.mrf.mxu2 }
 0x20b   :  { %v905_v20 = vadd.f32 %v1824_v2, %v904_v19 }
 0x20c   :  { %v1060_v21 = vpop.f32.mrf.mxu3 }
 0x20d   :  { %v947_v23 = vmax.f32 %v905_v20, 0.0  ;;  %v1546_v24 = vpack.c.bf16 %v1060_v21, %v1058_v17 }
 0x20f   :  { %v966_v25 = vpack.c.bf16 %v947_v23, %v946_v22  ;;  %1610 = vst [vmem:[#allocation11 + $0x18] sm:$0xff] %v1546_v24  }
 0x211   :  { %1102 = vmatmul.bf16.gmra.mxu3 %v966_v25 }
 0x212   :  { %v907_v26 = vpop.f32.mrf.mxu2 }
 0x213   :  { %v908_v28 = vadd.f32 %v1824_v2, %v907_v26 }
 0x214   :  { %v1063_v27 = vpop.f32.mrf.mxu3 }
 0x215   :  { %v948_v32 = vmax.f32 %v908_v28, 0.0 }
 0x21a   :  { %v909_v29 = vpop.f32.mrf.mxu2 }
 0x21b   :  { %v910_v30 = vadd.f32 %v1824_v2, %v909_v29 }
 0x21c   :  { %v1065_v31 = vpop.f32.mrf.mxu3 }
 0x21d   :  { %v949_v33 = vmax.f32 %v910_v30, 0.0  ;;  %v1551_v34 = vpack.c.bf16 %v1065_v31, %v1063_v27 }
 0x21f   :  { %v967_v35 = vpack.c.bf16 %v949_v33, %v948_v32  ;;  %1611 = vst [vmem:[#allocation11 + $0x20] sm:$0xff] %v1551_v34  }
 0x221   :  { %1107 = vmatmul.bf16.gmra.mxu3 %v967_v35 }
 0x222   :  { %v912_v36 = vpop.f32.mrf.mxu2 }
 0x223   :  { %v913_v38 = vadd.f32 %v1824_v2, %v912_v36 }
 0x224   :  { %v1068_v37 = vpop.f32.mrf.mxu3 }
 0x225   :  { %v950_v42 = vmax.f32 %v913_v38, 0.0 }
 0x22a   :  { %v914_v39 = vpop.f32.mrf.mxu2 }
 0x22b   :  { %v915_v40 = vadd.f32 %v1824_v2, %v914_v39 }
 0x22c   :  { %v1070_v41 = vpop.f32.mrf.mxu3 }
 0x22d   :  { %v951_v43 = vmax.f32 %v915_v40, 0.0  ;;  %v1556_v44 = vpack.c.bf16 %v1070_v41, %v1068_v37 }
 0x22f   :  { %v968_v45 = vpack.c.bf16 %v951_v43, %v950_v42  ;;  %1612 = vst [vmem:[#allocation11 + $0x28] sm:$0xff] %v1556_v44  }
 0x231   :  { %1112 = vmatmul.bf16.gmra.mxu3 %v968_v45 }
 0x232   :  { %v917_v46 = vpop.f32.mrf.mxu2 }
 0x233   :  { %v918_v48 = vadd.f32 %v1824_v2, %v917_v46 }
 0x234   :  { %v1073_v47 = vpop.f32.mrf.mxu3 }
 0x235   :  { %v952_v52 = vmax.f32 %v918_v48, 0.0 }
 0x23a   :  { %v919_v49 = vpop.f32.mrf.mxu2 }
 0x23b   :  { %v920_v50 = vadd.f32 %v1824_v2, %v919_v49 }
 0x23c   :  { %v1075_v51 = vpop.f32.mrf.mxu3 }
 0x23d   :  { %v953_v53 = vmax.f32 %v920_v50, 0.0  ;;  %v1561_v54 = vpack.c.bf16 %v1075_v51, %v1073_v47 }
 0x23f   :  { %v969_v55 = vpack.c.bf16 %v953_v53, %v952_v52  ;;  %1613 = vst [vmem:[#allocation11 + $0x30] sm:$0xff] %v1561_v54  }
 0x241   :  { %1117 = vmatmul.bf16.gmra.mxu3 %v969_v55 }
 0x244   :  { %v1078_v56 = vpop.f32.mrf.mxu3 }
 0x24c   :  { %v1080_v57 = vpop.f32.mrf.mxu3 }
 0x24d   :  { %v1566_v58 = vpack.c.bf16 %v1080_v57, %v1078_v56 }
 0x24f   :  { %1614 = vst [vmem:[#allocation11 + $0x38] sm:$0xff] %v1566_v58  }
 0x254   :  { %v1083_v59 = vpop.f32.mrf.mxu3 }
 0x25c   :  { %v1085_v60 = vpop.f32.mrf.mxu3 }
 0x25d   :  { %v1571_v61 = vpack.c.bf16 %v1085_v60, %v1083_v59 }
 0x25f   :  { %1615 = vst [vmem:[#allocation11 + $0x40] sm:$0xff] %v1571_v61  }
 0x264   :  { %v1088_v62 = vpop.f32.mrf.mxu3 }
 0x26c   :  { %v1090_v63 = vpop.f32.mrf.mxu3 }
 0x26d   :  { %v1576_v0 = vpack.c.bf16 %v1090_v63, %v1088_v62 }
 0x26f   :  { %1616 = vst [vmem:[#allocation11 + $0x48] sm:$0xff] %v1576_v0  }
 0x274   :  { %v1093_v2 = vpop.f32.mrf.mxu3 }
 0x27c   :  { %v1095_v1 = vpop.f32.mrf.mxu3 }
 0x27d   :  { %v1581_v3 = vpack.c.bf16 %v1095_v1, %v1093_v2 }
 0x27f   :  { %1617 = vst [vmem:[#allocation11 + $0x50] sm:$0xff] %v1581_v3  }
 0x284   :  { %v1098_v4 = vpop.f32.mrf.mxu3 }
 0x28c   :  { %v1100_v5 = vpop.f32.mrf.mxu3 }
 0x28d   :  { %v1586_v6 = vpack.c.bf16 %v1100_v5, %v1098_v4 }
 0x28f   :  { %1618 = vst [vmem:[#allocation11 + $0x58] sm:$0xff] %v1586_v6  }
 0x294   :  { %v1103_v7 = vpop.f32.mrf.mxu3 }
 0x29c   :  { %v1105_v8 = vpop.f32.mrf.mxu3 }
 0x29d   :  { %v1591_v9 = vpack.c.bf16 %v1105_v8, %v1103_v7 }
 0x29f   :  { %1619 = vst [vmem:[#allocation11 + $0x60] sm:$0xff] %v1591_v9  }
 0x2a4   :  { %v1108_v10 = vpop.f32.mrf.mxu3 }
 0x2ac   :  { %v1110_v11 = vpop.f32.mrf.mxu3 }
 0x2ad   :  { %v1596_v12 = vpack.c.bf16 %v1110_v11, %v1108_v10 }
 0x2af   :  { %1620 = vst [vmem:[#allocation11 + $0x68] sm:$0xff] %v1596_v12  }
 0x2b4   :  { %v1113_v13 = vpop.f32.mrf.mxu3 }
 0x2bc   :  { %v1115_v14 = vpop.f32.mrf.mxu3 }
 0x2bd   :  { %v1601_v15 = vpack.c.bf16 %v1115_v14, %v1113_v13 }
 0x2bf   :  { %1621 = vst [vmem:[#allocation11 + $0x70] sm:$0xff] %v1601_v15  }
 0x2c4   :  { %v1118_v16 = vpop.f32.mrf.mxu3 }
 0x2cc   :  { %v1120_v17 = vpop.f32.mrf.mxu3 }
 0x2cd   :  { %v1606_v18 = vpack.c.bf16 %v1120_v17, %v1118_v16 }
 0x2cf   :  { %1622 = vst [vmem:[#allocation11 + $0x78] sm:$0xff] %v1606_v18  }
 0x2d0   :  { %1199 = dma.vmem_to_hbm [thread:$0]  %s1192_s15, 2048, %s1194_s18, [#allocation5], %s1762_s26, %s1762_s26, %s1763_s27  }
 0x2d1   :  { %1759 = dma.done.wait [#allocation5], 2048  }
 0x2d2   :  { %1760 = vsyncadd [#allocation5], 4294965248 }
 0x2d3   :  { %1204 = vsyncpa [#allocation4], 1 }
 0x2d4   :  { %1205 = vsyncpa [#allocation7], 1 }
 0x2d5   :  { %1206 = vsyncpa [#allocation10], 1 }
 0x2d6   :  { %1207 = vsyncpa [#allocation5], 1 }

</bundles_post_ra>
